<compile_context>
chip_gen: v5e
topology: v5e:2x2
jax: 0.10.0
libtpu: 0.0.40
codegen_flags: <defaults>
</compile_context>

<pallas_src>
import functools

import jax
import jax.numpy as jnp
from jax.experimental import pallas as pl
from jax.experimental.pallas import tpu as pltpu


_VMEM_TRANSIENT_BUDGET = 12 * 1024 * 1024   # budget for in-kernel transients
_VMEM_LIMIT_BYTES = 40 * 1024 * 1024        # safe on v5e/v6e (128 MiB) and v7x (64 MiB)


def _round_up(x, m):
    return ((x + m - 1) // m) * m


def lfm_fused_kernel(ids_ref, table_ref, out_ref):
    """Fused embedding gather + field interaction + sigmoid.

    ids_ref   : (2, tb)     int32  -- offset ids for field 0 / field 1 (batch on lanes).
    table_ref : (D, F_pad)  f32    -- transposed, zero-padded embedding table (resident).
    out_ref   : (1, tb)     f32    -- sigmoid(<e0, e1>) per sample (lane-dense).
    """
    ids = ids_ref[...]                                     # (2, tb) int32
    table_t = table_ref[...]                               # (D, F_pad) f32
    f_pad = table_t.shape[1]
    tb = ids.shape[1]

    # One-hot gather via the MXU: onehot[f, b] = (ids[b] == f).
    f_iota = jax.lax.broadcasted_iota(jnp.int32, (f_pad, tb), 0)
    oh0 = (f_iota == ids[0:1, :]).astype(table_t.dtype)    # (F_pad, tb)
    oh1 = (f_iota == ids[1:2, :]).astype(table_t.dtype)    # (F_pad, tb)

    e0 = jnp.dot(table_t, oh0, preferred_element_type=jnp.float32)   # (D, tb)
    e1 = jnp.dot(table_t, oh1, preferred_element_type=jnp.float32)   # (D, tb)

    # Field interaction: elementwise multiply, reduce over embedding dim (sublanes).
    dot = jnp.sum(e0 * e1, axis=0, keepdims=True)          # (1, tb)
    out_ref[...] = jax.nn.sigmoid(dot).astype(out_ref.dtype)


@functools.partial(jax.jit, static_argnames=("max_tb",))
def lfm_forward(x, emb_table, offsets, *, max_tb=8192):
    """x: [B, 2] int ids per field; emb_table: [total_features, D]; offsets: [2]."""
    B = x.shape[0]
    F, D = emb_table.shape

    # ---- static tiling decisions (all derived from static shapes) ----------
    F_pad = _round_up(F, 128)                 # lane dim of table_t / sublane dim of one-hot
    b_lanes = _round_up(max(B, 1), 128)

    # Clamp tb so per-step transients (2 one-hots + 2 gathered slabs) fit VMEM.
    bytes_per_sample = 4 * (2 * F_pad + 2 * D) + 16
    tb_cap = max(128, (_VMEM_TRANSIENT_BUDGET // bytes_per_sample) // 128 * 128)

    tb = min(max_tb, tb_cap, b_lanes)
    # Prefer >= 2 grid steps when the batch allows it (v7x has 2 TensorCores).
    if b_lanes > 128 and tb >= b_lanes:
        tb = max(128, _round_up(b_lanes // 2, 128))

    nb = pl.cdiv(b_lanes, tb)
    B_pad = nb * tb

    # ---- glue: offset ids, stack fields on sublanes, zero-pad tail ---------
    idx = (x.astype(jnp.int32) + offsets[None, :].astype(jnp.int32)).T   # (2, B)
    idx = jnp.pad(idx, ((0, 0), (0, B_pad - B)))          # padded ids = 0 (valid row)

    # Transposed, zero-padded table: (D, F_pad). Tiny; DMA'd once (constant index_map).
    table_t = jnp.pad(emb_table.T.astype(jnp.float32), ((0, 0), (0, F_pad - F)))

    out = pl.pallas_call(
        lfm_fused_kernel,
        out_shape=jax.ShapeDtypeStruct((1, B_pad), jnp.float32),
        grid_spec=pltpu.PrefetchScalarGridSpec(
            num_scalar_prefetch=0,
            grid=(nb,),
            in_specs=[
                pl.BlockSpec((2, tb), lambda i: (0, i)),        # ids, per grid step
                pl.BlockSpec((D, F_pad), lambda i: (0, 0)),     # table, resident
            ],
            out_specs=pl.BlockSpec((1, tb), lambda i: (0, i)),  # lane-dense output
        ),
        compiler_params=pltpu.CompilerParams(
            dimension_semantics=("parallel",),
            vmem_limit_bytes=_VMEM_LIMIT_BYTES,
        ),
    )(idx, table_t)

    # (1, B_pad) -> (B, 1); padded tail lanes (valid but unused) are discarded.
    return out[0, :B][:, None]


def lfm_reference(x, emb_table, offsets):
    idx = x + offsets[None, :]
    emb = jnp.take(emb_table, idx, axis=0)
    out = jnp.sum(emb[:, 0, :] * emb[:, 1, :], axis=1, keepdims=True)
    return jax.nn.sigmoid(out)


if __name__ == "__main__":
    # Model hyperparameters (mirrors LFM(feature_nums, emd_dim) with 2 fields).
    feature_nums = (10, 20)
    emd_dim = 32
    total_features = sum(feature_nums)
    offsets = jnp.array([0, feature_nums[0]], dtype=jnp.int32)

    # Deterministic parameter init (synthetic "checkpoint").
    key = jax.random.PRNGKey(0)
    k_emb, k_u, k_i = jax.random.split(key, 3)
    emb_table = (0.01 * jax.random.normal(k_emb, (total_features, emd_dim))).astype(jnp.float32)

    # Example inputs: batch of 8 (user_id, item_id) pairs.
    batch = 8
    user_ids = jax.random.randint(k_u, (batch, 1), 0, feature_nums[0], dtype=jnp.int32)
    item_ids = jax.random.randint(k_i, (batch, 1), 0, feature_nums[1], dtype=jnp.int32)
    x = jnp.concatenate([user_ids, item_ids], axis=1)  # [B, 2] int32

    out = lfm_forward(x, emb_table, offsets)
    out = jax.block_until_ready(out)

    ref = lfm_reference(x, emb_table, offsets)
    assert out.shape == (batch, 1), out.shape
    assert jnp.allclose(out, ref, atol=3e-5, rtol=3e-5), (out, ref)

    print("KERNEL_OK")
</pallas_src>

<mosaic_0001>
module attributes {stable_mosaic.version = 11 : i64} {
  func.func @lfm_fused_kernel(%arg0: i32, %arg1: memref<2x128xi32, #tpu.memory_space<vmem>>, %arg2: memref<32x128xf32, #tpu.memory_space<vmem>>, %arg3: memref<1x128xf32, #tpu.memory_space<vmem>>) attributes {dimension_semantics = [#tpu.dimension_semantics<parallel>], iteration_bounds = array<i64: 1>, scalar_prefetch = 0 : i64, scratch_operands = 0 : i64, tpu.core_type = #tpu.core_type<tc>, window_params = [{transform_indices = @transform_0, window_bounds = array<i64: 2, 128>}, {pipeline_mode = #tpu.pipeline_mode<synchronous>, transform_indices = @transform_1, window_bounds = array<i64: 32, 128>}, {transform_indices = @transform_2, window_bounds = array<i64: 1, 128>}]} {
    %c0 = arith.constant 0 : index
    %c0_0 = arith.constant 0 : index
    %0 = vector.load %arg1[%c0, %c0_0] : memref<2x128xi32, #tpu.memory_space<vmem>>, vector<2x128xi32>
    %c0_1 = arith.constant 0 : index
    %c0_2 = arith.constant 0 : index
    %1 = vector.load %arg2[%c0_1, %c0_2] : memref<32x128xf32, #tpu.memory_space<vmem>>, vector<32x128xf32>
    %2 = tpu.iota {dimensions = array<i32: 0>} : vector<128x128xi32>
    %3 = vector.extract_strided_slice %0 {offsets = [0, 0], sizes = [1, 128], strides = [1, 1]} : vector<2x128xi32> to vector<1x128xi32>
    %4 = vector.broadcast %3 : vector<1x128xi32> to vector<128x128xi32>
    %5 = arith.cmpi eq, %2, %4 : vector<128x128xi32>
    %6 = arith.extui %5 : vector<128x128xi1> to vector<128x128xi32>
    %7 = arith.sitofp %6 : vector<128x128xi32> to vector<128x128xf32>
    %8 = vector.extract_strided_slice %0 {offsets = [1, 0], sizes = [1, 128], strides = [1, 1]} : vector<2x128xi32> to vector<1x128xi32>
    %9 = vector.broadcast %8 : vector<1x128xi32> to vector<128x128xi32>
    %10 = arith.cmpi eq, %2, %9 : vector<128x128xi32>
    %11 = arith.extui %10 : vector<128x128xi1> to vector<128x128xi32>
    %12 = arith.sitofp %11 : vector<128x128xi32> to vector<128x128xf32>
    %cst = arith.constant dense<0.000000e+00> : vector<32x128xf32>
    %13 = tpu.matmul %1, %7, %cst {dimension_numbers = #tpu.dot_dimension_numbers<[1], [0], [0], [1], [0, 0, 1, 1], [], []>} : vector<32x128xf32>, vector<128x128xf32>, vector<32x128xf32> -> vector<32x128xf32>
    %cst_3 = arith.constant dense<0.000000e+00> : vector<32x128xf32>
    %14 = tpu.matmul %1, %12, %cst_3 {dimension_numbers = #tpu.dot_dimension_numbers<[1], [0], [0], [1], [0, 0, 1, 1], [], []>} : vector<32x128xf32>, vector<128x128xf32>, vector<32x128xf32> -> vector<32x128xf32>
    %15 = arith.mulf %13, %14 : vector<32x128xf32>
    %cst_4 = arith.constant dense<0.000000e+00> : vector<128xf32>
    %16 = vector.multi_reduction <add>, %15, %cst_4 [0] : vector<32x128xf32> to vector<128xf32>
    %17 = vector.shape_cast %16 : vector<128xf32> to vector<1x128xf32>
    %18 = arith.negf %17 : vector<1x128xf32>
    %19 = math.exp %18 : vector<1x128xf32>
    %cst_5 = arith.constant 1.000000e+00 : f32
    %20 = vector.broadcast %cst_5 : f32 to vector<1x128xf32>
    %21 = arith.addf %20, %19 : vector<1x128xf32>
    %22 = arith.divf %20, %21 : vector<1x128xf32>
    %c0_6 = arith.constant 0 : index
    %c0_7 = arith.constant 0 : index
    %23 = vector.load %arg3[%c0_6, %c0_7] : memref<1x128xf32, #tpu.memory_space<vmem>>, vector<1x128xf32>
    tpu.vector_store %arg3[%c0_6, %c0_7], %22 {strides = array<i32>} : memref<1x128xf32, #tpu.memory_space<vmem>>, vector<1x128xf32>,
    return
  }
  func.func @transform_0(%arg0: i32) -> (i32, i32) {
    %c0_i32 = arith.constant 0 : i32
    %c0_i32_0 = arith.constant 0 : i32
    return %c0_i32, %arg0 : i32, i32
  }
  func.func @transform_1(%arg0: i32) -> (i32, i32) {
    %c0_i32 = arith.constant 0 : i32
    %c0_i32_0 = arith.constant 0 : i32
    %c0_i32_1 = arith.constant 0 : i32
    return %c0_i32, %c0_i32_0 : i32, i32
  }
  func.func @transform_2(%arg0: i32) -> (i32, i32) {
    %c0_i32 = arith.constant 0 : i32
    %c0_i32_0 = arith.constant 0 : i32
    return %c0_i32, %arg0 : i32, i32
  }
}

</mosaic_0001>

<bundles_post_ra>
// kernel: lfm_forward.1
= control target key start
LH: loop header
LB: loop body
LE: loop exit
PB: predicated region body
PF: predicated region fallthrough
CT: control target
= control target key end

     0   :  { %v16_v0 = vlaneseq  ;;  %v328_v9 = vmov 1.0   ;;  %s481_s0 = inlined_call_operand.vmem [shape: s32[2,128], index: 0, kind: input, shape index: {}]   ;;  %s482_s1 = inlined_call_operand.vmem [shape: f32[32,128], index: 1, kind: input, shape index: {}]   ;;  %s483_s2 = inlined_call_operand.vmem [shape: f32[1,128], index: 2, kind: output, shape index: {}]  }
   0x1   :  { %v11_v1 = vld [vmem:[%s481_s0] sm:$0x3]  ;;  %v14_v22 = vld [vmem:[%s482_s1 + $0x10] sm:$0xff]  ;;  %v13_v23 = vld [vmem:[%s482_s1 + $0x8] sm:$0xff] }
   0x2   :  { %v347_v2 = vshrl.u32 %v16_v0, 7  ;;  %v349_v3 = vperm.slane %v11_v1, 0  ;;  %v351_v4 = vperm.slane %v11_v1, 1  ;;  %v12_v21 = vld [vmem:[%s482_s1] sm:$0xff]  ;;  %v15_v24 = vld [vmem:[%s482_s1 + $0x18] sm:$0xff] }
   0x4   :  { %v32_v5 = vadd.s32 120, %v347_v2  ;;  %v31_v6 = vadd.s32 112, %v347_v2  ;;  %v30_v7 = vadd.s32 104, %v347_v2  ;;  %v29_v8 = vadd.s32 96, %v347_v2 }
   0x5   :  { %v28_v10 = vadd.s32 88, %v347_v2  ;;  %v27_v11 = vadd.s32 80, %v347_v2  ;;  %v26_v12 = vadd.s32 72, %v347_v2  ;;  %v25_v13 = vadd.s32 64, %v347_v2 }
   0x6   :  { %vm49_vm0 = vcmp.eq.s32.totalorder %v32_v5, %v349_v3  ;;  %vm98_vm1 = vcmp.eq.s32.totalorder %v32_v5, %v351_v4  ;;  %vm48_vm2 = vcmp.eq.s32.totalorder %v31_v6, %v349_v3  ;;  %vm97_vm3 = vcmp.eq.s32.totalorder %v31_v6, %v351_v4 }
   0x7   :  { %258 = vmatpush.msk.msra.mxu0 %vm49_vm0, %v328_v9  ;;  %291 = vmatpush.msk.msra.mxu2 %vm49_vm0, %v328_v9  ;;  %vm47_vm4 = vcmp.eq.s32.totalorder %v30_v7, %v349_v3  ;;  %vm96_vm5 = vcmp.eq.s32.totalorder %v30_v7, %v351_v4  ;;  %vm46_vm6 = vcmp.eq.s32.totalorder %v29_v8, %v349_v3  ;;  %v24_v14 = vadd.s32 56, %v347_v2 }
   0x8   :  { %274 = vmatpush.msk.msra.mxu1 %vm98_vm1, %v328_v9  ;;  %307 = vmatpush.msk.msra.mxu3 %vm98_vm1, %v328_v9  ;;  %vm95_vm7 = vcmp.eq.s32.totalorder %v29_v8, %v351_v4  ;;  %vm45_vm8 = vcmp.eq.s32.totalorder %v28_v10, %v349_v3  ;;  %vm94_vm9 = vcmp.eq.s32.totalorder %v28_v10, %v351_v4  ;;  %v23_v15 = vadd.s32 48, %v347_v2 }
   0x9   :  { %259 = vmatpush.msk.msra.mxu0 %vm48_vm2, %v328_v9  ;;  %292 = vmatpush.msk.msra.mxu2 %vm48_vm2, %v328_v9  ;;  %vm44_vm10 = vcmp.eq.s32.totalorder %v27_v11, %v349_v3  ;;  %vm93_vm11 = vcmp.eq.s32.totalorder %v27_v11, %v351_v4  ;;  %vm43_vm12 = vcmp.eq.s32.totalorder %v26_v12, %v349_v3  ;;  %v22_v16 = vadd.s32 40, %v347_v2 }
   0xa   :  { %275 = vmatpush.msk.msra.mxu1 %vm97_vm3, %v328_v9  ;;  %308 = vmatpush.msk.msra.mxu3 %vm97_vm3, %v328_v9  ;;  %vm92_vm13 = vcmp.eq.s32.totalorder %v26_v12, %v351_v4  ;;  %vm42_vm14 = vcmp.eq.s32.totalorder %v25_v13, %v349_v3  ;;  %vm91_vm15 = vcmp.eq.s32.totalorder %v25_v13, %v351_v4  ;;  %v21_v17 = vadd.s32 32, %v347_v2 }
   0xb   :  { %260 = vmatpush.msk.msra.mxu0 %vm47_vm4, %v328_v9  ;;  %293 = vmatpush.msk.msra.mxu2 %vm47_vm4, %v328_v9  ;;  %vm41_vm0 = vcmp.eq.s32.totalorder %v24_v14, %v349_v3  ;;  %vm90_vm1 = vcmp.eq.s32.totalorder %v24_v14, %v351_v4  ;;  %vm40_vm2 = vcmp.eq.s32.totalorder %v23_v15, %v349_v3  ;;  %v20_v18 = vadd.s32 24, %v347_v2 }
   0xc   :  { %276 = vmatpush.msk.msra.mxu1 %vm96_vm5, %v328_v9  ;;  %309 = vmatpush.msk.msra.mxu3 %vm96_vm5, %v328_v9  ;;  %vm89_vm3 = vcmp.eq.s32.totalorder %v23_v15, %v351_v4  ;;  %vm39_vm4 = vcmp.eq.s32.totalorder %v22_v16, %v349_v3  ;;  %vm88_vm5 = vcmp.eq.s32.totalorder %v22_v16, %v351_v4  ;;  %v19_v19 = vadd.s32 16, %v347_v2 }
   0xd   :  { %261 = vmatpush.msk.msra.mxu0 %vm46_vm6, %v328_v9  ;;  %294 = vmatpush.msk.msra.mxu2 %vm46_vm6, %v328_v9  ;;  %vm38_vm6 = vcmp.eq.s32.totalorder %v21_v17, %v349_v3  ;;  %v18_v20 = vadd.s32 8, %v347_v2 }
   0xe   :  { %277 = vmatpush.msk.msra.mxu1 %vm95_vm7, %v328_v9  ;;  %310 = vmatpush.msk.msra.mxu3 %vm95_vm7, %v328_v9  ;;  %vm87_vm7 = vcmp.eq.s32.totalorder %v21_v17, %v351_v4 }
   0xf   :  { %262 = vmatpush.msk.msra.mxu0 %vm45_vm8, %v328_v9  ;;  %295 = vmatpush.msk.msra.mxu2 %vm45_vm8, %v328_v9  ;;  %vm37_vm8 = vcmp.eq.s32.totalorder %v20_v18, %v349_v3 }
  0x10   :  { %278 = vmatpush.msk.msra.mxu1 %vm94_vm9, %v328_v9  ;;  %311 = vmatpush.msk.msra.mxu3 %vm94_vm9, %v328_v9  ;;  %vm86_vm9 = vcmp.eq.s32.totalorder %v20_v18, %v351_v4 }
  0x11   :  { %263 = vmatpush.msk.msra.mxu0 %vm44_vm10, %v328_v9  ;;  %296 = vmatpush.msk.msra.mxu2 %vm44_vm10, %v328_v9  ;;  %vm36_vm10 = vcmp.eq.s32.totalorder %v19_v19, %v349_v3 }
  0x12   :  { %279 = vmatpush.msk.msra.mxu1 %vm93_vm11, %v328_v9  ;;  %312 = vmatpush.msk.msra.mxu3 %vm93_vm11, %v328_v9  ;;  %vm85_vm11 = vcmp.eq.s32.totalorder %v19_v19, %v351_v4 }
  0x13   :  { %264 = vmatpush.msk.msra.mxu0 %vm43_vm12, %v328_v9  ;;  %297 = vmatpush.msk.msra.mxu2 %vm43_vm12, %v328_v9  ;;  %vm35_vm12 = vcmp.eq.s32.totalorder %v18_v20, %v349_v3 }
  0x14   :  { %280 = vmatpush.msk.msra.mxu1 %vm92_vm13, %v328_v9  ;;  %313 = vmatpush.msk.msra.mxu3 %vm92_vm13, %v328_v9  ;;  %vm84_vm13 = vcmp.eq.s32.totalorder %v18_v20, %v351_v4 }
  0x15   :  { %265 = vmatpush.msk.msra.mxu0 %vm42_vm14, %v328_v9  ;;  %298 = vmatpush.msk.msra.mxu2 %vm42_vm14, %v328_v9  ;;  %vm34_vm14 = vcmp.eq.s32.totalorder %v347_v2, %v349_v3 }
  0x16   :  { %281 = vmatpush.msk.msra.mxu1 %vm91_vm15, %v328_v9  ;;  %314 = vmatpush.msk.msra.mxu3 %vm91_vm15, %v328_v9  ;;  %vm83_vm15 = vcmp.eq.s32.totalorder %v347_v2, %v351_v4 }
  0x17   :  { %266 = vmatpush.msk.msra.mxu0 %vm41_vm0, %v328_v9  ;;  %299 = vmatpush.msk.msra.mxu2 %vm41_vm0, %v328_v9 }
  0x18   :  { %282 = vmatpush.msk.msra.mxu1 %vm90_vm1, %v328_v9  ;;  %315 = vmatpush.msk.msra.mxu3 %vm90_vm1, %v328_v9 }
  0x19   :  { %267 = vmatpush.msk.msra.mxu0 %vm40_vm2, %v328_v9  ;;  %300 = vmatpush.msk.msra.mxu2 %vm40_vm2, %v328_v9 }
  0x1a   :  { %283 = vmatpush.msk.msra.mxu1 %vm89_vm3, %v328_v9  ;;  %316 = vmatpush.msk.msra.mxu3 %vm89_vm3, %v328_v9 }
  0x1b   :  { %268 = vmatpush.msk.msra.mxu0 %vm39_vm4, %v328_v9  ;;  %301 = vmatpush.msk.msra.mxu2 %vm39_vm4, %v328_v9 }
  0x1c   :  { %284 = vmatpush.msk.msra.mxu1 %vm88_vm5, %v328_v9  ;;  %317 = vmatpush.msk.msra.mxu3 %vm88_vm5, %v328_v9 }
  0x1d   :  { %269 = vmatpush.msk.msra.mxu0 %vm38_vm6, %v328_v9  ;;  %302 = vmatpush.msk.msra.mxu2 %vm38_vm6, %v328_v9 }
  0x1e   :  { %285 = vmatpush.msk.msra.mxu1 %vm87_vm7, %v328_v9  ;;  %318 = vmatpush.msk.msra.mxu3 %vm87_vm7, %v328_v9 }
  0x1f   :  { %270 = vmatpush.msk.msra.mxu0 %vm37_vm8, %v328_v9  ;;  %303 = vmatpush.msk.msra.mxu2 %vm37_vm8, %v328_v9 }
  0x20   :  { %286 = vmatpush.msk.msra.mxu1 %vm86_vm9, %v328_v9  ;;  %319 = vmatpush.msk.msra.mxu3 %vm86_vm9, %v328_v9 }
  0x21   :  { %271 = vmatpush.msk.msra.mxu0 %vm36_vm10, %v328_v9  ;;  %304 = vmatpush.msk.msra.mxu2 %vm36_vm10, %v328_v9 }
  0x22   :  { %287 = vmatpush.msk.msra.mxu1 %vm85_vm11, %v328_v9  ;;  %320 = vmatpush.msk.msra.mxu3 %vm85_vm11, %v328_v9 }
  0x23   :  { %272 = vmatpush.msk.msra.mxu0 %vm35_vm12, %v328_v9  ;;  %305 = vmatpush.msk.msra.mxu2 %vm35_vm12, %v328_v9 }
  0x24   :  { %288 = vmatpush.msk.msra.mxu1 %vm84_vm13, %v328_v9  ;;  %321 = vmatpush.msk.msra.mxu3 %vm84_vm13, %v328_v9 }
  0x25   :  { %273 = vmatpush.msk.msra.mxu0 %vm34_vm14, %v328_v9  ;;  %306 = vmatpush.msk.msra.mxu2 %vm34_vm14, %v328_v9 }
  0x26   :  { %289 = vmatpush.msk.msra.mxu1 %vm83_vm15, %v328_v9  ;;  %322 = vmatpush.msk.msra.mxu3 %vm83_vm15, %v328_v9 }
  0x27   :  { %147 = vmatmul.f32.vlgmr.msra.gmra.mxu0 %v12_v21  ;;  %153 = vmatmul.f32.vlgmr.msra.gmra.mxu2 %v14_v22 }
  0x28   :  { %176 = vmatmul.f32.vlgmr.msra.gmra.mxu1 %v12_v21  ;;  %182 = vmatmul.f32.vlgmr.msra.gmra.mxu3 %v14_v22 }
  0x2f   :  { %150 = vmatmul.f32.gmra.mxu0 %v13_v23  ;;  %156 = vmatmul.f32.gmra.mxu2 %v15_v24 }
  0x30   :  { %179 = vmatmul.f32.gmra.mxu1 %v13_v23  ;;  %185 = vmatmul.f32.gmra.mxu3 %v15_v24 }
  0xa4   :  { %v148_v25 = vpop.f32.mrf.mxu0 }
  0xa5   :  { %v177_v26 = vpop.f32.mrf.mxu1 }
  0xa6   :  { %v189_v31 = vmul.f32 %v177_v26, %v148_v25 }
  0xaa   :  { %v154_v27 = vpop.f32.mrf.mxu2 }
  0xab   :  { %v183_v28 = vpop.f32.mrf.mxu3 }
  0xac   :  { %v151_v29 = vpop.f32.mrf.mxu0  ;;  %v191_v34 = vmul.f32 %v183_v28, %v154_v27 }
  0xad   :  { %v180_v30 = vpop.f32.mrf.mxu1 }
  0xae   :  { %v190_v32 = vmul.f32 %v180_v30, %v151_v29 }
  0xb0   :  { %v193_v33 = vadd.f32 %v190_v32, %v189_v31 }
  0xb2   :  { %v157_v35 = vpop.f32.mrf.mxu2  ;;  %v194_v38 = vadd.f32 %v193_v33, %v191_v34 }
  0xb3   :  { %v186_v36 = vpop.f32.mrf.mxu3 }
  0xb4   :  { %v192_v37 = vmul.f32 %v186_v36, %v157_v35 }
  0xb6   :  { %v195_v39 = vadd.f32 %v194_v38, %v192_v37 }
  0xb8   :  { %v196_v40 = vrot.slane %v195_v39, 4 }
  0xba   :  { %v197_v41 = vadd.f32 %v196_v40, %v195_v39 }
  0xbc   :  { %v198_v42 = vrot.slane %v197_v41, 2 }
  0xbe   :  { %v199_v43 = vadd.f32 %v198_v42, %v197_v41 }
  0xc0   :  { %v200_v44 = vrot.slane %v199_v43, 1 }
  0xc2   :  { %v201_v45 = vadd.f32 %v200_v44, %v199_v43 }
  0xc4   :  { %v290_v46 = vmul.f32 -1.442695, %v201_v45 }
  0xc6   :  { %324 = vpow2.f32 %v290_v46 }
  0xcc   :  { %v325_v47 = vpop.eup %324 }
  0xcd   :  { %v205_v48 = vadd.f32 1.0, %v325_v47 }
  0xcf   :  { %326 = vrcp.f32 %v205_v48  ;;  %v217_v52 = vand.u32 2147483648, %v205_v48  ;;  %v215_v54 = vand.u32 2147483647, %v205_v48  ;;  %vm211_vm1 = vweird.f32 %v205_v48 }
  0xd1   :  { %v218_v56 = vor.u32 1.1754944e-38, %v217_v52  ;;  %vm216_vm3 = vcmp.eq.f32.partialorder %v215_v54, 8.507059e+37 }
  0xd5   :  { %v327_v49 = vpop.eup %326 }
  0xd6   :  { %v207_v50 = vmul.f32 %v327_v49, %v205_v48  ;;  %vm212_vm0 = vweird.f32 %v327_v49 }
  0xd7   :  { %vm213_vm2 = vmor %vm211_vm1, %vm212_vm0 }
  0xd8   :  { %v208_v51 = vsub.f32 1.0, %v207_v50 }
  0xda   :  { %v209_v53 = vmul.f32 %v327_v49, %v208_v51 }
  0xdc   :  { %v210_v55 = vadd.f32 %v327_v49, %v209_v53 }
  0xde   :  { %v214_v57 = vsel %vm213_vm2, %v327_v49, %v210_v55 }
  0xdf   :  { %v219_v58 = vsel %vm216_vm3, %v218_v56, %v214_v57 }
  0xe0   :  { %221 = vst [vmem:[%s483_s2] sm:$0x1] %v219_v58 }

</bundles_post_ra>
